<compile_context>
chip_gen: v7x
topology: tpu7x:2x2x1
jax: 0.10.0
libtpu: 0.0.40
codegen_flags: <defaults>
</compile_context>

<pallas_src>
import functools

import jax
import jax.numpy as jnp
import numpy as np
from jax import lax
from jax.experimental import pallas as pl
from jax.experimental.pallas import tpu as pltpu

_LANES = 128
_SUBLANES = 8


def _wrmse_kernel(w_ref, p_ref, t_ref, o_ref, *, rows_per_blk, cols_per_blk,
                  n_rows, n_cols, mask_rows, mask_cols):
    # p_ref / t_ref: (G, Lc) block of the (BC, HW)-flattened inputs.
    # w_ref:         (1, Lc) latitude-weight row for this column block.
    # o_ref:         (1, 1, 1, Lc) partial sums for this (row, col) block.
    diff = p_ref[...].astype(jnp.float32) - t_ref[...].astype(jnp.float32)
    sq = diff * diff

    # Mask ragged tails: boundary blocks read unspecified values past the true
    # array edge; kill them before any reduction (cheap VPU select).
    if mask_rows or mask_cols:
        mask = None
        if mask_rows:
            r = (lax.broadcasted_iota(jnp.int32, (rows_per_blk, 1), 0)
                 + pl.program_id(0) * rows_per_blk)
            mask = r < n_rows
        if mask_cols:
            c = (lax.broadcasted_iota(jnp.int32, (1, cols_per_blk), 1)
                 + pl.program_id(1) * cols_per_blk)
            cm = c < n_cols
            mask = cm if mask is None else jnp.logical_and(mask, cm)
        sq = jnp.where(mask, sq, 0.0)

    # Reduce over the image axis first (vreg-wise VPU adds + one small sublane
    # collapse), then apply the latitude weight ONCE per column.
    ssq = jnp.sum(sq, axis=0, keepdims=True)          # (1, Lc)
    o_ref[...] = (ssq * w_ref[...])[None, None]       # (1, 1, 1, Lc)


def weighted_rmse(predictions, targets, lat_weights=None, *,
                  max_rows_per_block=None, max_cols_per_block=None):
    """predictions, targets: (B, C, H, W); lat_weights: (H,) or None."""
    assert predictions.shape == targets.shape
    B, C, H, W = predictions.shape
    BC = B * C
    HW = H * W
    itemsize = jnp.dtype(predictions.dtype).itemsize

    # ---- generation-aware VMEM budget --------------------------------------
    try:
        vmem_cap = int(getattr(pltpu.get_tpu_info(), "vmem_capacity_bytes",
                               64 << 20))
    except Exception:
        vmem_cap = 64 << 20            # assume the smallest (v7x) if unknown
    vmem_limit = min(100 << 20, max(32 << 20, vmem_cap - (24 << 20)))
    # 2 inputs x 2 pipeline buffers = 4 blocks <= half the scoped limit; the
    # rest covers the weight row, f32 temporaries (bf16 inputs), the tiny
    # output block and Mosaic internal scratch.
    block_elems = max(_SUBLANES * _LANES, (vmem_limit // 8) // itemsize)

    # ---- tiling: columns (flattened H*W), then rows (B*C images) -----------
    col_budget = max(_LANES, block_elems // _SUBLANES)
    if max_cols_per_block is not None:
        col_budget = min(col_budget, max_cols_per_block)
    if HW <= col_budget:
        Lc = HW                                    # full-dim block: always legal
    else:
        Lc = min(HW, max(_LANES, (col_budget // _LANES) * _LANES))
    n_c = pl.cdiv(HW, Lc)

    row_budget = max(1, block_elems // Lc)
    if max_rows_per_block is not None:
        row_budget = min(row_budget, max_rows_per_block)
    if row_budget >= BC:
        G = BC                                     # full-dim block: always legal
    else:
        G = min(BC, max(_SUBLANES, (row_budget // _SUBLANES) * _SUBLANES))
    n_r = pl.cdiv(BC, G)

    mask_rows = (BC % G) != 0
    mask_cols = (HW % Lc) != 0

    # ---- latitude weight row (tiny; only thing that ever gets padded) ------
    if lat_weights is None:
        w_lat = jnp.ones((H,), jnp.float32)
    else:
        w_lat = jnp.asarray(lat_weights, jnp.float32).reshape(H)
    w_row = jnp.broadcast_to(w_lat.reshape(H, 1), (H, W)).reshape(1, HW)
    w_total = n_c * Lc
    if w_total != HW:
        w_row = jnp.pad(w_row, ((0, 0), (0, w_total - HW)))

    # Free reshapes only — no data copies of the big arrays.
    p2 = predictions.reshape(BC, HW)
    t2 = targets.reshape(BC, HW)

    kernel = functools.partial(
        _wrmse_kernel, rows_per_blk=G, cols_per_blk=Lc,
        n_rows=BC, n_cols=HW, mask_rows=mask_rows, mask_cols=mask_cols)

    partials = pl.pallas_call(
        kernel,
        out_shape=jax.ShapeDtypeStruct((n_r, n_c, 1, Lc), jnp.float32),
        grid_spec=pltpu.PrefetchScalarGridSpec(
            num_scalar_prefetch=0,
            grid=(n_r, n_c),
            in_specs=[
                pl.BlockSpec((1, Lc), lambda i, j: (0, j)),     # weights
                pl.BlockSpec((G, Lc), lambda i, j: (i, j)),     # predictions
                pl.BlockSpec((G, Lc), lambda i, j: (i, j)),     # targets
            ],
            out_specs=pl.BlockSpec((1, 1, 1, Lc), lambda i, j: (i, j, 0, 0)),
        ),
        compiler_params=pltpu.CompilerParams(
            dimension_semantics=("parallel", "parallel"),  # no carried state
            vmem_limit_bytes=vmem_limit,
        ),
    )(w_row, p2, t2)

    total = jnp.sum(partials, dtype=jnp.float32)
    numel = jnp.asarray(BC * HW, jnp.float32)   # TRUE count; masked tails are 0
    return jnp.sqrt(total / numel)


def make_lat_weights(n_lat):
    # Deterministic stand-in for reading latitude from a NetCDF file:
    # evenly spaced latitudes, cosine weighting normalized to unit mean.
    lat = np.linspace(-90.0 + 90.0 / n_lat, 90.0 - 90.0 / n_lat, n_lat)
    w_lat = np.cos(np.deg2rad(lat))
    w_lat = w_lat / w_lat.mean()
    return jnp.asarray(w_lat, dtype=jnp.float32)


def weighted_rmse_ref(predictions, targets, lat_weights):
    w = lat_weights.reshape(1, 1, -1, 1).astype(jnp.float32)
    d = predictions.astype(jnp.float32) - targets.astype(jnp.float32)
    return jnp.sqrt(jnp.mean(w * d * d))


if __name__ == "__main__":
    key = jax.random.PRNGKey(0)

    # Primary test: small shapes consistent with the module's (B, C, H, W).
    B, C, H, W = 2, 4, 16, 16
    kp, kt = jax.random.split(key)
    preds = jax.random.normal(kp, (B, C, H, W), dtype=jnp.float32)
    targs = jax.random.normal(kt, (B, C, H, W), dtype=jnp.float32)
    w_lat = make_lat_weights(H)

    out = weighted_rmse(preds, targs, w_lat)
    jax.block_until_ready(out)
    ref = weighted_rmse_ref(preds, targs, w_lat)
    np.testing.assert_allclose(np.asarray(out), np.asarray(ref),
                               rtol=1e-5, atol=1e-5)

    # Ragged + bf16 test: force small blocks (G=8 over BC=20, Lc=256 over
    # HW=688) to exercise the masked multi-block path that production grids
    # (e.g. 721x1440) would take — no wrapper-side padding of the data.
    B2, C2, H2, W2 = 4, 5, 16, 43
    k1, k2 = jax.random.split(kt)
    p2 = jax.random.normal(k1, (B2, C2, H2, W2), dtype=jnp.float32).astype(jnp.bfloat16)
    t2 = jax.random.normal(k2, (B2, C2, H2, W2), dtype=jnp.float32).astype(jnp.bfloat16)
    w2 = make_lat_weights(H2)
    out2 = weighted_rmse(p2, t2, w2, max_rows_per_block=8, max_cols_per_block=256)
    jax.block_until_ready(out2)
    ref2 = weighted_rmse_ref(p2, t2, w2)
    np.testing.assert_allclose(np.asarray(out2), np.asarray(ref2),
                               rtol=1e-4, atol=1e-4)

    print("KERNEL_OK")
</pallas_src>

<mosaic_0001>
module attributes {stable_mosaic.version = 11 : i64} {
  func.func @_wrmse_kernel(%arg0: i32, %arg1: i32, %arg2: memref<1x256xf32, #tpu.memory_space<vmem>>, %arg3: memref<8x256xf32, #tpu.memory_space<vmem>>, %arg4: memref<8x256xf32, #tpu.memory_space<vmem>>, %arg5: memref<1x1x1x256xf32, #tpu.memory_space<vmem>>) attributes {dimension_semantics = [#tpu.dimension_semantics<parallel>, #tpu.dimension_semantics<parallel>], iteration_bounds = array<i64: 1, 1>, scalar_prefetch = 0 : i64, scratch_operands = 0 : i64, tpu.core_type = #tpu.core_type<tc>, window_params = [{transform_indices = @transform_0, window_bounds = array<i64: 1, 256>}, {transform_indices = @transform_1, window_bounds = array<i64: 8, 256>}, {transform_indices = @transform_2, window_bounds = array<i64: 8, 256>}, {transform_indices = @transform_3, window_bounds = array<i64: 1, 1, 1, 256>}]} {
    %c0 = arith.constant 0 : index
    %c0_0 = arith.constant 0 : index
    %0 = vector.load %arg3[%c0, %c0_0] : memref<8x256xf32, #tpu.memory_space<vmem>>, vector<8x256xf32>
    %c0_1 = arith.constant 0 : index
    %c0_2 = arith.constant 0 : index
    %1 = vector.load %arg4[%c0_1, %c0_2] : memref<8x256xf32, #tpu.memory_space<vmem>>, vector<8x256xf32>
    %2 = arith.subf %0, %1 : vector<8x256xf32>
    %3 = arith.mulf %2, %2 : vector<8x256xf32>
    %cst = arith.constant dense<0.000000e+00> : vector<256xf32>
    %4 = vector.multi_reduction <add>, %3, %cst [0] : vector<8x256xf32> to vector<256xf32>
    %5 = vector.shape_cast %4 : vector<256xf32> to vector<1x256xf32>
    %c0_3 = arith.constant 0 : index
    %c0_4 = arith.constant 0 : index
    %6 = vector.load %arg2[%c0_3, %c0_4] : memref<1x256xf32, #tpu.memory_space<vmem>>, vector<1x256xf32>
    %7 = arith.mulf %5, %6 : vector<1x256xf32>
    %8 = vector.shape_cast %7 : vector<1x256xf32> to vector<1x1x1x256xf32>
    %c0_5 = arith.constant 0 : index
    %c0_6 = arith.constant 0 : index
    %c0_7 = arith.constant 0 : index
    %c0_8 = arith.constant 0 : index
    %9 = vector.load %arg5[%c0_5, %c0_6, %c0_7, %c0_8] : memref<1x1x1x256xf32, #tpu.memory_space<vmem>>, vector<1x1x1x256xf32>
    tpu.vector_store %arg5[%c0_5, %c0_6, %c0_7, %c0_8], %8 {strides = array<i32>} : memref<1x1x1x256xf32, #tpu.memory_space<vmem>>, vector<1x1x1x256xf32>,
    return
  }
  func.func @transform_0(%arg0: i32, %arg1: i32) -> (i32, i32) {
    %c0_i32 = arith.constant 0 : i32
    %c0_i32_0 = arith.constant 0 : i32
    return %c0_i32, %arg1 : i32, i32
  }
  func.func @transform_1(%arg0: i32, %arg1: i32) -> (i32, i32) {
    %c0_i32 = arith.constant 0 : i32
    return %arg0, %arg1 : i32, i32
  }
  func.func @transform_2(%arg0: i32, %arg1: i32) -> (i32, i32) {
    %c0_i32 = arith.constant 0 : i32
    return %arg0, %arg1 : i32, i32
  }
  func.func @transform_3(%arg0: i32, %arg1: i32) -> (i32, i32, i32, i32) {
    %c0_i32 = arith.constant 0 : i32
    %c0_i32_0 = arith.constant 0 : i32
    %c0_i32_1 = arith.constant 0 : i32
    return %arg0, %arg1, %c0_i32, %c0_i32_0 : i32, i32, i32, i32
  }
}

</mosaic_0001>

<bundles_post_ra>
// kernel: tpu_custom_call.1
= control target key start
LH: loop header
LB: loop body
LE: loop exit
PB: predicated region body
PF: predicated region fallthrough
CT: control target
= control target key end

     0   :  { %8 = vsyncpa [#allocation3], 0  ;;  %s295_s0 = inlined_call_operand.hbm [shape: f32[1,256], index: 0, kind: input, shape index: {}]   ;;  %s296_s1 = inlined_call_operand.hbm [shape: f32[8,256], index: 1, kind: input, shape index: {}]   ;;  %s297_s2 = inlined_call_operand.hbm [shape: f32[8,256], index: 2, kind: input, shape index: {}]   ;;  %s298_s3 = inlined_call_operand.hbm [shape: f32[1,1,1,256], index: 3, kind: output, shape index: {}]  }
   0x1   :  { %9 = vsyncpa [#allocation6], 0 }
   0x2   :  { %10 = vsyncpa [#allocation4], 0  ;;  %s222_s12 = smov [#allocation5]   ;;  %s223_s14 = smov [#allocation2]  }
   0x3   :  { %s27_s13 = sshll.u32 %s222_s12, 4  ;;  %s17_s15 = sshll.u32 %s223_s14, 4  ;;  %s28_s13 = int_to_ptr.vmem [resolvable:$true] %s27_s13  ;;  %s18_s15 = int_to_ptr.vmem [resolvable:$true] %s17_s15 }
   0x4   :  { %s128_s18 = scalar_lea.hbm %s296_s1, 256 }
   0x5   :  { %p129_p0 = scmp.ne.s32.totalorder %s296_s1, %s128_s18  ;;  %p132_p1 = scmp.lt.u32.totalorder %s128_s18, %s296_s1 }
   0x7   :  { %p134_p2 = pnand %p132_p1, %p129_p0 }
   0x9   :  { %137 = shalt.err (!%p134_p2)
}
   0xa   :  { %s138_s23 = scalar_lea.vmem %s28_s13, 256  ;;  %p143_p4 = scmp.lt.s32.totalorder %s28_s13, %s28_s13 }
   0xb   :  { %p139_p3 = scmp.ne.s32.totalorder %s28_s13, %s138_s23  ;;  %p144_p5 = scmp.lt.s32.totalorder %s138_s23, %s138_s23 }
   0xd   :  { %p145_p6 = por %p144_p5, %p143_p4 }
   0xf   :  { %p146_p7 = pnand %p145_p6, %p139_p3 }
  0x11   :  { %149 = shalt.err (!%p146_p7)
}
  0x12   :  { %30 = dma.hbm_to_vmem [thread:$0]  %s296_s1, 256, %s28_s13, [#allocation6]  }
  0x13   :  { %s150_s28 = scalar_lea.hbm %s295_s0, 32 }
  0x14   :  { %p151_p8 = scmp.ne.s32.totalorder %s295_s0, %s150_s28  ;;  %p154_p9 = scmp.lt.u32.totalorder %s150_s28, %s295_s0 }
  0x16   :  { %p156_p10 = pnand %p154_p9, %p151_p8 }
  0x18   :  { %159 = shalt.err (!%p156_p10)
}
  0x19   :  { %s160_s6 = scalar_lea.vmem %s18_s15, 32  ;;  %p165_p12 = scmp.lt.s32.totalorder %s18_s15, %s18_s15 }
  0x1a   :  { %p161_p11 = scmp.ne.s32.totalorder %s18_s15, %s160_s6  ;;  %p166_p13 = scmp.lt.s32.totalorder %s160_s6, %s160_s6 }
  0x1c   :  { %p167_p0 = por %p166_p13, %p165_p12 }
  0x1e   :  { %p168_p1 = pnand %p167_p0, %p161_p11 }
  0x20   :  { %171 = shalt.err (!%p168_p1)
}
  0x21   :  { %20 = dma.hbm_to_vmem [thread:$0]  %s295_s0, 32, %s18_s15, [#allocation3]  }
  0x22   :  { %s224_s8 = smov [#allocation7]   ;;  %s172_s12 = scalar_lea.hbm %s297_s2, 256 }
  0x23   :  { %s37_s9 = sshll.u32 %s224_s8, 4  ;;  %p173_p2 = scmp.ne.s32.totalorder %s297_s2, %s172_s12  ;;  %s38_s9 = int_to_ptr.vmem [resolvable:$true] %s37_s9 }
  0x24   :  { %p176_p3 = scmp.lt.u32.totalorder %s172_s12, %s297_s2 }
  0x26   :  { %p178_p4 = pnand %p176_p3, %p173_p2 }
  0x28   :  { %181 = shalt.err (!%p178_p4)
}
  0x29   :  { %s182_s18 = scalar_lea.vmem %s38_s9, 256  ;;  %p187_p6 = scmp.lt.s32.totalorder %s38_s9, %s38_s9 }
  0x2a   :  { %p183_p5 = scmp.ne.s32.totalorder %s38_s9, %s182_s18  ;;  %p188_p7 = scmp.lt.s32.totalorder %s182_s18, %s182_s18 }
  0x2c   :  { %p189_p8 = por %p188_p7, %p187_p6 }
  0x2e   :  { %p190_p9 = pnand %p189_p8, %p183_p5 }
  0x30   :  { %193 = shalt.err (!%p190_p9)
}
  0x31   :  { %40 = dma.hbm_to_vmem [thread:$0]  %s297_s2, 256, %s38_s9, [#allocation6]  }
  0x32   :  { %216 = dma.done.wait [#allocation3], 32  }
  0x33   :  { %217 = vsyncadd [#allocation3], 4294967264 }
  0x34   :  { %218 = dma.done.wait [#allocation6], 512  }
  0x35   :  { %219 = vsyncadd [#allocation6], 4294966784  ;;  %v50_v0 = vld [vmem:[#allocation5] sm:$0xff]  ;;  %v51_v1 = vld [vmem:[#allocation5 + $0x8] sm:$0xff]  ;;  %v72_v5 = vlaneseq  ;;  %v225_v19 = vmov 1966171168  }
  0x36   :  { %v52_v2 = vld [vmem:[#allocation7] sm:$0xff]  ;;  %v53_v3 = vld [vmem:[#allocation7 + $0x8] sm:$0xff]  ;;  %v88_v20 = vunpack.c.l.s4 %v225_v19  ;;  %s226_s2 = smov [#allocation8]  }
  0x37   :  { %v54_v4 = vsub.f32 %v50_v0, %v52_v2  ;;  %v55_v6 = vsub.f32 %v51_v1, %v53_v3  ;;  %v73_v10 = vshrl.u32 %v72_v5, 7  ;;  %v70_v17 = vld [vmem:[#allocation2] sm:$0x3]  ;;  %s113_s19 = sshll.u32 %s226_s2, 4  ;;  %vm104_vm0 = vcmp.lt.s32.totalorder %v72_v5, 256  ;;  %s114_s19 = int_to_ptr.vmem [resolvable:$true] %s113_s19 }
  0x38   :  { %v89_v27 = vunpack.c.0.s8 %v88_v20  ;;  %s194_s20 = scalar_lea.vmem %s114_s19, 32  ;;  %p199_p11 = scmp.lt.s32.totalorder %s114_s19, %s114_s19 }
  0x39   :  { %v56_v7 = vmul.f32 %v54_v4, %v54_v4  ;;  %v57_v8 = vmul.f32 %v55_v6, %v55_v6  ;;  %v74_v15 = vsub.s32 0, %v73_v10  ;;  %v78_v18 = vsub.s32 1, %v73_v10  ;;  %p195_p10 = scmp.ne.s32.totalorder %s114_s19, %s194_s20  ;;  %p200_p12 = scmp.lt.s32.totalorder %s194_s20, %s194_s20 }
  0x3a   :  { %v92_v32 = vsub.s32 %v89_v27, %v73_v10 }
  0x3b   :  { %v58_v9 = vrot.slane %v56_v7, 4  ;;  %v64_v11 = vrot.slane %v57_v8, 4  ;;  %v75_v24 = vrot.slane %v70_v17, %v74_v15  ;;  %v79_v26 = vrot.slane %v70_v17, %v78_v18  ;;  %p201_p13 = por %p200_p12, %p199_p11 }
  0x3d   :  { %v59_v12 = vadd.f32 %v58_v9, %v56_v7  ;;  %v65_v13 = vadd.f32 %v64_v11, %v57_v8  ;;  %p202_p0 = pnand %p201_p13, %p195_p10 }
  0x3f   :  { %v60_v14 = vrot.slane %v59_v12, 2  ;;  %v66_v16 = vrot.slane %v65_v13, 2 }
  0x41   :  { %v61_v21 = vadd.f32 %v60_v14, %v59_v12  ;;  %v67_v22 = vadd.f32 %v66_v16, %v65_v13 }
  0x43   :  { %v62_v23 = vrot.slane %v61_v21, 1  ;;  %v68_v25 = vrot.slane %v67_v22, 1 }
  0x45   :  { %v63_v28 = vadd.f32 %v62_v23, %v61_v21  ;;  %v69_v29 = vadd.f32 %v68_v25, %v67_v22 }
  0x47   :  { %v82_v30 = vmul.f32 %v75_v24, %v63_v28  ;;  %v83_v31 = vmul.f32 %v79_v26, %v69_v29 }
  0x49   :  { %v86_v33 = vcombine.low %v82_v30, %v83_v31 }
  0x4b   :  { %v93_v34 = vrot.slane %v86_v33, %v92_v32 }
  0x4d   :  { %v100_v35 = vrot.slane %v93_v34, %v92_v32 }
  0x4f   :  { %106 = vst.msk [vmem:[#allocation8] sm:$0x3] %vm104_vm0, %v100_v35 }
  0x50   :  { %205 = shalt.err (!%p202_p0)
}
  0x51   :  { %s206_s23 = scalar_lea.hbm %s298_s3, 32 }
  0x52   :  { %p207_p1 = scmp.ne.s32.totalorder %s298_s3, %s206_s23  ;;  %p210_p2 = scmp.lt.u32.totalorder %s206_s23, %s298_s3 }
  0x54   :  { %p212_p3 = pnand %p210_p2, %p207_p1 }
  0x56   :  { %215 = shalt.err (!%p212_p3)
}
  0x57   :  { %116 = dma.vmem_to_hbm [thread:$0]  %s114_s19, 32, %s298_s3, [#allocation4]  }
  0x58   :  { %220 = dma.done.wait [#allocation4], 32  }
  0x59   :  { %221 = vsyncadd [#allocation4], 4294967264 }
  0x5a   :  { %120 = vsyncpa [#allocation3], 1 }
  0x5b   :  { %121 = vsyncpa [#allocation6], 1 }
  0x5c   :  { %122 = vsyncpa [#allocation4], 1 }

</bundles_post_ra>
